<compile_context>
chip_gen: v6e
topology: v6e:2x2x1
jax: 0.10.0
libtpu: 0.0.40
codegen_flags: <defaults>
</compile_context>

<pallas_src>
import jax
import jax.numpy as jnp
from jax.experimental import pallas as pl
from jax.experimental.pallas import tpu as pltpu

dim_input = 4
dim_hidden = 6
dim_output = 2

# Packed parameter slab layout (single (8, 128) f32 tile):
#   rows [0:dim_hidden],            cols [0:dim_input]  -> W1  (out, in) = (6, 4)
#   rows [0:dim_hidden],            col  [dim_input]    -> b1  (6,)
#   rows [dim_hidden:dim_hidden+2], cols [0:dim_hidden] -> W2  (out, in) = (2, 6)
#   rows [dim_hidden:dim_hidden+2], col  [dim_hidden]   -> b2  (2,)
_SLAB_SHAPE = (8, 128)


def controller_kernel(x_ref, p_ref, o_ref):
    # x_ref: (dim_input, batch)  -- batch on the lane axis
    # p_ref: (8, 128) packed parameter slab
    # o_ref: (dim_output, batch)
    x = x_ref[...]  # (4, B) f32

    # Static slices of the packed slab (cheap sub-tile loads).
    w1 = p_ref[0:dim_hidden, 0:dim_input]                                   # (6, 4)
    b1 = p_ref[0:dim_hidden, dim_input:dim_input + 1]                       # (6, 1)
    w2 = p_ref[dim_hidden:dim_hidden + dim_output, 0:dim_hidden]            # (2, 6)
    b2 = p_ref[dim_hidden:dim_hidden + dim_output, dim_hidden:dim_hidden + 1]  # (2, 1)

    # Layer 1: h = tanh(W1 @ x + b1), unrolled as VPU broadcast MACs (no MXU).
    acc1 = w1[:, 0:1] * x[0:1, :]                       # (6, B)
    for k in range(1, dim_input):
        acc1 = acc1 + w1[:, k:k + 1] * x[k:k + 1, :]
    h = jnp.tanh(acc1 + b1)                             # (6, B)

    # Layer 2: y = sigmoid(W2 @ h + b2), unrolled as VPU broadcast MACs.
    acc2 = w2[:, 0:1] * h[0:1, :]                       # (2, B)
    for j in range(1, dim_hidden):
        acc2 = acc2 + w2[:, j:j + 1] * h[j:j + 1, :]
    o_ref[...] = jax.nn.sigmoid(acc2 + b2)              # (2, B)


def pack_params(w1, b1, w2, b2):
    """Fold (W1, b1, W2, b2) in PyTorch (out, in) layout into one (8, 128) slab."""
    p = jnp.zeros(_SLAB_SHAPE, jnp.float32)
    p = p.at[0:dim_hidden, 0:dim_input].set(w1)
    p = p.at[0:dim_hidden, dim_input].set(b1)
    p = p.at[dim_hidden:dim_hidden + dim_output, 0:dim_hidden].set(w2)
    p = p.at[dim_hidden:dim_hidden + dim_output, dim_hidden].set(b2)
    return p


@jax.jit
def controller_forward(state, params):
    """state: (batch, dim_input) -> action: (batch, dim_output), matching Controller.forward."""
    batch = state.shape[0]
    x_t = state.T.astype(jnp.float32)  # (dim_input, batch): batch on lanes
    out_t = pl.pallas_call(
        controller_kernel,
        out_shape=jax.ShapeDtypeStruct((dim_output, batch), jnp.float32),
        in_specs=[
            pl.BlockSpec(memory_space=pltpu.MemorySpace.VMEM),  # state (transposed)
            pl.BlockSpec(memory_space=pltpu.MemorySpace.VMEM),  # packed params
        ],
        out_specs=pl.BlockSpec(memory_space=pltpu.MemorySpace.VMEM),
    )(x_t, params)
    return out_t.T  # (batch, dim_output)


def init_params(key):
    """Deterministic init mimicking nn.Linear's uniform(-1/sqrt(fan_in), 1/sqrt(fan_in)).

    Weights are kept in PyTorch's native (out_features, in_features) layout.
    """
    k1, k2, k3, k4 = jax.random.split(key, 4)
    bound1 = 1.0 / jnp.sqrt(dim_input)
    bound2 = 1.0 / jnp.sqrt(dim_hidden)
    w1 = jax.random.uniform(k1, (dim_hidden, dim_input), jnp.float32, -bound1, bound1)
    b1 = jax.random.uniform(k2, (dim_hidden,), jnp.float32, -bound1, bound1)
    w2 = jax.random.uniform(k3, (dim_output, dim_hidden), jnp.float32, -bound2, bound2)
    b2 = jax.random.uniform(k4, (dim_output,), jnp.float32, -bound2, bound2)
    return w1, b1, w2, b2


def reference_forward(state, w1, b1, w2, b2):
    h = jnp.tanh(state @ w1.T + b1)
    return jax.nn.sigmoid(h @ w2.T + b2)


if __name__ == "__main__":
    key = jax.random.PRNGKey(0)
    k_params, k_state = jax.random.split(key)

    batch = 8
    w1, b1, w2, b2 = init_params(k_params)
    params = pack_params(w1, b1, w2, b2)
    state = jax.random.normal(k_state, (batch, dim_input), jnp.float32)

    action = controller_forward(state, params)
    action = jax.block_until_ready(action)

    expected = reference_forward(state, w1, b1, w2, b2)
    assert action.shape == (batch, dim_output)
    assert jnp.allclose(action, expected, atol=1e-5, rtol=1e-5)

    print("KERNEL_OK")
</pallas_src>

<mosaic_0001>
module attributes {stable_mosaic.version = 11 : i64} {
  func.func @controller_kernel(%arg0: memref<4x8xf32, #tpu.memory_space<vmem>>, %arg1: memref<8x128xf32, #tpu.memory_space<vmem>>, %arg2: memref<2x8xf32, #tpu.memory_space<vmem>>) attributes {dimension_semantics = [], scalar_prefetch = 0 : i64, scratch_operands = 0 : i64, tpu.core_type = #tpu.core_type<tc>} {
    %c0 = arith.constant 0 : index
    %c0_0 = arith.constant 0 : index
    %0 = vector.load %arg0[%c0, %c0_0] : memref<4x8xf32, #tpu.memory_space<vmem>>, vector<4x8xf32>
    %c0_1 = arith.constant 0 : index
    %c0_2 = arith.constant 0 : index
    %1 = vector.load %arg1[%c0_1, %c0_2] : memref<8x128xf32, #tpu.memory_space<vmem>>, vector<6x4xf32>
    %c0_3 = arith.constant 0 : index
    %c4 = arith.constant 4 : index
    %2 = vector.load %arg1[%c0_3, %c4] : memref<8x128xf32, #tpu.memory_space<vmem>>, vector<6x1xf32>
    %c6 = arith.constant 6 : index
    %c0_4 = arith.constant 0 : index
    %3 = vector.load %arg1[%c6, %c0_4] : memref<8x128xf32, #tpu.memory_space<vmem>>, vector<2x6xf32>
    %c6_5 = arith.constant 6 : index
    %c6_6 = arith.constant 6 : index
    %4 = vector.load %arg1[%c6_5, %c6_6] : memref<8x128xf32, #tpu.memory_space<vmem>>, vector<2x1xf32>
    %5 = vector.extract_strided_slice %1 {offsets = [0, 0], sizes = [6, 1], strides = [1, 1]} : vector<6x4xf32> to vector<6x1xf32>
    %6 = vector.extract_strided_slice %0 {offsets = [0, 0], sizes = [1, 8], strides = [1, 1]} : vector<4x8xf32> to vector<1x8xf32>
    %7 = vector.broadcast %5 : vector<6x1xf32> to vector<6x8xf32>
    %8 = vector.broadcast %6 : vector<1x8xf32> to vector<6x8xf32>
    %9 = arith.mulf %7, %8 : vector<6x8xf32>
    %10 = vector.extract_strided_slice %1 {offsets = [0, 1], sizes = [6, 1], strides = [1, 1]} : vector<6x4xf32> to vector<6x1xf32>
    %11 = vector.extract_strided_slice %0 {offsets = [1, 0], sizes = [1, 8], strides = [1, 1]} : vector<4x8xf32> to vector<1x8xf32>
    %12 = vector.broadcast %10 : vector<6x1xf32> to vector<6x8xf32>
    %13 = vector.broadcast %11 : vector<1x8xf32> to vector<6x8xf32>
    %14 = arith.mulf %12, %13 : vector<6x8xf32>
    %15 = arith.addf %9, %14 : vector<6x8xf32>
    %16 = vector.extract_strided_slice %1 {offsets = [0, 2], sizes = [6, 1], strides = [1, 1]} : vector<6x4xf32> to vector<6x1xf32>
    %17 = vector.extract_strided_slice %0 {offsets = [2, 0], sizes = [1, 8], strides = [1, 1]} : vector<4x8xf32> to vector<1x8xf32>
    %18 = vector.broadcast %16 : vector<6x1xf32> to vector<6x8xf32>
    %19 = vector.broadcast %17 : vector<1x8xf32> to vector<6x8xf32>
    %20 = arith.mulf %18, %19 : vector<6x8xf32>
    %21 = arith.addf %15, %20 : vector<6x8xf32>
    %22 = vector.extract_strided_slice %1 {offsets = [0, 3], sizes = [6, 1], strides = [1, 1]} : vector<6x4xf32> to vector<6x1xf32>
    %23 = vector.extract_strided_slice %0 {offsets = [3, 0], sizes = [1, 8], strides = [1, 1]} : vector<4x8xf32> to vector<1x8xf32>
    %24 = vector.broadcast %22 : vector<6x1xf32> to vector<6x8xf32>
    %25 = vector.broadcast %23 : vector<1x8xf32> to vector<6x8xf32>
    %26 = arith.mulf %24, %25 : vector<6x8xf32>
    %27 = arith.addf %21, %26 : vector<6x8xf32>
    %28 = vector.broadcast %2 : vector<6x1xf32> to vector<6x8xf32>
    %29 = arith.addf %27, %28 : vector<6x8xf32>
    %30 = math.tanh %29 : vector<6x8xf32>
    %31 = vector.extract_strided_slice %3 {offsets = [0, 0], sizes = [2, 1], strides = [1, 1]} : vector<2x6xf32> to vector<2x1xf32>
    %32 = vector.extract_strided_slice %30 {offsets = [0, 0], sizes = [1, 8], strides = [1, 1]} : vector<6x8xf32> to vector<1x8xf32>
    %33 = vector.broadcast %31 : vector<2x1xf32> to vector<2x8xf32>
    %34 = vector.broadcast %32 : vector<1x8xf32> to vector<2x8xf32>
    %35 = arith.mulf %33, %34 : vector<2x8xf32>
    %36 = vector.extract_strided_slice %3 {offsets = [0, 1], sizes = [2, 1], strides = [1, 1]} : vector<2x6xf32> to vector<2x1xf32>
    %37 = vector.extract_strided_slice %30 {offsets = [1, 0], sizes = [1, 8], strides = [1, 1]} : vector<6x8xf32> to vector<1x8xf32>
    %38 = vector.broadcast %36 : vector<2x1xf32> to vector<2x8xf32>
    %39 = vector.broadcast %37 : vector<1x8xf32> to vector<2x8xf32>
    %40 = arith.mulf %38, %39 : vector<2x8xf32>
    %41 = arith.addf %35, %40 : vector<2x8xf32>
    %42 = vector.extract_strided_slice %3 {offsets = [0, 2], sizes = [2, 1], strides = [1, 1]} : vector<2x6xf32> to vector<2x1xf32>
    %43 = vector.extract_strided_slice %30 {offsets = [2, 0], sizes = [1, 8], strides = [1, 1]} : vector<6x8xf32> to vector<1x8xf32>
    %44 = vector.broadcast %42 : vector<2x1xf32> to vector<2x8xf32>
    %45 = vector.broadcast %43 : vector<1x8xf32> to vector<2x8xf32>
    %46 = arith.mulf %44, %45 : vector<2x8xf32>
    %47 = arith.addf %41, %46 : vector<2x8xf32>
    %48 = vector.extract_strided_slice %3 {offsets = [0, 3], sizes = [2, 1], strides = [1, 1]} : vector<2x6xf32> to vector<2x1xf32>
    %49 = vector.extract_strided_slice %30 {offsets = [3, 0], sizes = [1, 8], strides = [1, 1]} : vector<6x8xf32> to vector<1x8xf32>
    %50 = vector.broadcast %48 : vector<2x1xf32> to vector<2x8xf32>
    %51 = vector.broadcast %49 : vector<1x8xf32> to vector<2x8xf32>
    %52 = arith.mulf %50, %51 : vector<2x8xf32>
    %53 = arith.addf %47, %52 : vector<2x8xf32>
    %54 = vector.extract_strided_slice %3 {offsets = [0, 4], sizes = [2, 1], strides = [1, 1]} : vector<2x6xf32> to vector<2x1xf32>
    %55 = vector.extract_strided_slice %30 {offsets = [4, 0], sizes = [1, 8], strides = [1, 1]} : vector<6x8xf32> to vector<1x8xf32>
    %56 = vector.broadcast %54 : vector<2x1xf32> to vector<2x8xf32>
    %57 = vector.broadcast %55 : vector<1x8xf32> to vector<2x8xf32>
    %58 = arith.mulf %56, %57 : vector<2x8xf32>
    %59 = arith.addf %53, %58 : vector<2x8xf32>
    %60 = vector.extract_strided_slice %3 {offsets = [0, 5], sizes = [2, 1], strides = [1, 1]} : vector<2x6xf32> to vector<2x1xf32>
    %61 = vector.extract_strided_slice %30 {offsets = [5, 0], sizes = [1, 8], strides = [1, 1]} : vector<6x8xf32> to vector<1x8xf32>
    %62 = vector.broadcast %60 : vector<2x1xf32> to vector<2x8xf32>
    %63 = vector.broadcast %61 : vector<1x8xf32> to vector<2x8xf32>
    %64 = arith.mulf %62, %63 : vector<2x8xf32>
    %65 = arith.addf %59, %64 : vector<2x8xf32>
    %66 = vector.broadcast %4 : vector<2x1xf32> to vector<2x8xf32>
    %67 = arith.addf %65, %66 : vector<2x8xf32>
    %68 = arith.negf %67 : vector<2x8xf32>
    %69 = math.exp %68 : vector<2x8xf32>
    %cst = arith.constant 1.000000e+00 : f32
    %70 = vector.broadcast %cst : f32 to vector<2x8xf32>
    %71 = arith.addf %70, %69 : vector<2x8xf32>
    %72 = arith.divf %70, %71 : vector<2x8xf32>
    %c0_7 = arith.constant 0 : index
    %c0_8 = arith.constant 0 : index
    %73 = vector.load %arg2[%c0_7, %c0_8] : memref<2x8xf32, #tpu.memory_space<vmem>>, vector<2x8xf32>
    tpu.vector_store %arg2[%c0_7, %c0_8], %72 {strides = array<i32>} : memref<2x8xf32, #tpu.memory_space<vmem>>, vector<2x8xf32>,
    return
  }
}

</mosaic_0001>

<bundles_post_ra>
// kernel: controller_forward.1
= control target key start
LH: loop header
LB: loop body
LE: loop exit
PB: predicated region body
PF: predicated region fallthrough
CT: control target
= control target key end

     0   :  { %7 = vsyncpa [#allocation3], 0  ;;  %s303_s0 = inlined_call_operand.hbm [shape: f32[4,8], index: 0, kind: input, shape index: {}]   ;;  %s304_s1 = inlined_call_operand.hbm [shape: f32[8,128], index: 1, kind: input, shape index: {}]   ;;  %s305_s2 = inlined_call_operand.hbm [shape: f32[2,8], index: 2, kind: output, shape index: {}]  }
   0x1   :  { %8 = vsyncpa [#allocation6], 0 }
   0x2   :  { %9 = vsyncpa [#allocation4], 0  ;;  %s269_s9 = smov [#allocation2]   ;;  %s270_s11 = smov [#allocation5]  }
   0x3   :  { %s16_s10 = sshll.u32 %s269_s9, 4  ;;  %s26_s12 = sshll.u32 %s270_s11, 4  ;;  %s17_s10 = int_to_ptr.vmem [resolvable:$true] %s16_s10  ;;  %s27_s12 = int_to_ptr.vmem [resolvable:$true] %s26_s12 }
   0x4   :  { %s211_s13 = scalar_lea.vmem %s17_s10, 64  ;;  %p216_p1 = scmp.lt.s32.totalorder %s17_s10, %s17_s10 }
   0x5   :  { %p212_p0 = scmp.ne.s32.totalorder %s17_s10, %s211_s13  ;;  %p217_p2 = scmp.lt.s32.totalorder %s211_s13, %s211_s13 }
   0x7   :  { %p218_p3 = por %p217_p2, %p216_p1 }
   0x9   :  { %p219_p4 = pnand %p218_p3, %p212_p0 }
   0xb   :  { %222 = shalt.err (!%p219_p4)
}
   0xc   :  { %19 = dma.hbm_to_vmem [thread:$0]  %s303_s0, 64, %s17_s10, [#allocation3]  }
   0xd   :  { %s231_s16 = scalar_lea.vmem %s27_s12, 128  ;;  %p236_p6 = scmp.lt.s32.totalorder %s27_s12, %s27_s12 }
   0xe   :  { %p232_p5 = scmp.ne.s32.totalorder %s27_s12, %s231_s16  ;;  %p237_p7 = scmp.lt.s32.totalorder %s231_s16, %s231_s16 }
  0x10   :  { %p238_p8 = por %p237_p7, %p236_p6 }
  0x12   :  { %p239_p9 = pnand %p238_p8, %p232_p5 }
  0x14   :  { %242 = shalt.err (!%p239_p9)
}
  0x15   :  { %29 = dma.hbm_to_vmem [thread:$0]  %s304_s1, 128, %s27_s12, [#allocation6]  }
  0x16   :  { %263 = dma.done.wait [#allocation3], 64  }
  0x17   :  { %264 = vsyncadd [#allocation3], 4294967232 }
  0x18   :  { %265 = dma.done.wait [#allocation6], 128  }
  0x19   :  { %266 = vsyncadd [#allocation6], 4294967168  ;;  %v271_v0 = vmov 0   ;;  %v272_v1 = vmov 2   ;;  %v37_v2 = vld [vmem:[#allocation5] sm:$0x3f]  ;;  %v44_v9 = vlaneseq }
  0x1a   :  { %185 = vset.pattern.permute.xlu0 %v271_v0  ;;  %187 = vset.pattern.permute.xlu1 %v272_v1  ;;  %v273_v3 = vmov 1   ;;  %v274_v4 = vmov 3   ;;  %v275_v5 = vmov 4   ;;  %v38_v6 = vld [vmem:[#allocation5 + $0x6] sm:$0x3]  ;;  %v276_v7 = vmov 6  }
  0x1b   :  { %41 = vperm.xlu0 %185, %v37_v2   ;;  %60 = vperm.xlu1 %187, %v37_v2   ;;  %v277_v8 = vmov 5   ;;  %v45_v10 = vshrl.u32 %v44_v9, 7  ;;  %v36_v13 = vld [vmem:[#allocation2] sm:$0xf]  ;;  %s278_s0 = smov [#allocation7]   ;;  %vm156_vm0 = vcmask 58368  }
  0x1c   :  { %s164_s1 = sshll.u32 %s278_s0, 4  ;;  %s165_s1 = int_to_ptr.vmem [resolvable:$true] %s164_s1 }
  0x1d   :  { %v46_v11 = vsub.s32 0, %v45_v10  ;;  %v55_v12 = vsub.s32 1, %v45_v10  ;;  %v65_v15 = vsub.s32 2, %v45_v10  ;;  %v75_v17 = vsub.s32 3, %v45_v10  ;;  %s243_s19 = scalar_lea.vmem %s165_s1, 32  ;;  %p248_p11 = scmp.lt.s32.totalorder %s165_s1, %s165_s1 }
  0x1e   :  { %v131_v39 = vsub.s32 4, %v45_v10  ;;  %v141_v44 = vsub.s32 5, %v45_v10  ;;  %p244_p10 = scmp.ne.s32.totalorder %s165_s1, %s243_s19  ;;  %p249_p12 = scmp.lt.s32.totalorder %s243_s19, %s243_s19 }
  0x1f   :  { %186 = vset.pattern.permute.xlu0 %v273_v3  ;;  %188 = vset.pattern.permute.xlu1 %v274_v4  ;;  %v47_v18 = vrot.slane %v36_v13, %v46_v11  ;;  %v56_v19 = vrot.slane %v36_v13, %v55_v12  ;;  %v66_v20 = vrot.slane %v36_v13, %v65_v15 }
  0x20   :  { %50 = vperm.xlu0 %186, %v37_v2   ;;  %70 = vperm.xlu1 %188, %v37_v2   ;;  %v76_v21 = vrot.slane %v36_v13, %v75_v17  ;;  %p250_p13 = por %p249_p12, %p248_p11 }
  0x22   :  { %p251_p0 = pnand %p250_p13, %p244_p10 }
  0x24   :  { %189 = vset.pattern.permute.xlu1 %v275_v5  ;;  %190 = vset.pattern.permute.xlu0 %v271_v0 }
  0x25   :  { %80 = vperm.xlu1 %189, %v37_v2   ;;  %87 = vperm.xlu0 %190, %v38_v6  }
  0x29   :  { %191 = vset.pattern.permute.xlu1 %v273_v3  ;;  %193 = vset.pattern.permute.xlu0 %v274_v4 }
  0x2a   :  { %96 = vperm.xlu1 %191, %v38_v6   ;;  %116 = vperm.xlu0 %193, %v38_v6  }
  0x2e   :  { %192 = vset.pattern.permute.xlu1 %v272_v1  ;;  %196 = vset.pattern.permute.xlu0 %v276_v7 }
  0x2f   :  { %106 = vperm.xlu1 %192, %v38_v6   ;;  %146 = vperm.xlu0 %196, %v38_v6  }
  0x33   :  { %194 = vset.pattern.permute.xlu1 %v275_v5 }
  0x34   :  { %126 = vperm.xlu1 %194, %v38_v6  }
  0x38   :  { %195 = vset.pattern.permute.xlu1 %v277_v8 }
  0x39   :  { %136 = vperm.xlu1 %195, %v38_v6  }
  0x96   :  { %v42_v14 = vpop.permute.xlu0 %41  ;;  %v61_v16 = vpop.permute.xlu1 %60 }
  0x97   :  { %v48_v24 = vmul.f32 %v47_v18, %v42_v14  ;;  %v67_v26 = vmul.f32 %v66_v20, %v61_v16 }
  0x9b   :  { %v51_v22 = vpop.permute.xlu0 %50  ;;  %v71_v23 = vpop.permute.xlu1 %70 }
  0x9c   :  { %v57_v25 = vmul.f32 %v56_v19, %v51_v22  ;;  %v77_v28 = vmul.f32 %v76_v21, %v71_v23 }
  0x9e   :  { %v58_v27 = vadd.f32 %v57_v25, %v48_v24 }
  0xa0   :  { %v68_v29 = vadd.f32 %v67_v26, %v58_v27  ;;  %v81_v30 = vpop.permute.xlu1 %80  ;;  %v88_v35 = vpop.permute.xlu0 %87 }
  0xa2   :  { %v78_v31 = vadd.f32 %v77_v28, %v68_v29 }
  0xa4   :  { %v83_v32 = vadd.f32 %v81_v30, %v78_v31 }
  0xa5   :  { %v97_v33 = vpop.permute.xlu1 %96  ;;  %v117_v46 = vpop.permute.xlu0 %116 }
  0xa6   :  { %197 = vtanh.f32 %v83_v32 }
  0xaa   :  { %v107_v34 = vpop.permute.xlu1 %106  ;;  %v147_v58 = vpop.permute.xlu0 %146 }
  0xaf   :  { %v127_v41 = vpop.permute.xlu1 %126 }
  0xb3   :  { %v198_v36 = vpop.eup %197 }
  0xb4   :  { %v102_v37 = vrot.slane %v198_v36, %v55_v12  ;;  %v112_v38 = vrot.slane %v198_v36, %v65_v15  ;;  %v93_v40 = vrot.slane %v198_v36, %v46_v11  ;;  %v122_v45 = vrot.slane %v198_v36, %v75_v17  ;;  %v137_v53 = vpop.permute.xlu1 %136 }
  0xb5   :  { %v132_v48 = vrot.slane %v198_v36, %v131_v39  ;;  %v142_v50 = vrot.slane %v198_v36, %v141_v44 }
  0xb6   :  { %v103_v42 = vmul.f32 %v102_v37, %v97_v33  ;;  %v94_v43 = vmul.f32 %v93_v40, %v88_v35  ;;  %v113_v47 = vmul.f32 %v112_v38, %v107_v34  ;;  %v123_v52 = vmul.f32 %v122_v45, %v117_v46 }
  0xb7   :  { %v133_v54 = vmul.f32 %v132_v48, %v127_v41  ;;  %v143_v56 = vmul.f32 %v142_v50, %v137_v53 }
  0xb8   :  { %v104_v49 = vadd.f32 %v103_v42, %v94_v43 }
  0xba   :  { %v114_v51 = vadd.f32 %v113_v47, %v104_v49 }
  0xbc   :  { %v124_v55 = vadd.f32 %v123_v52, %v114_v51 }
  0xbe   :  { %v134_v57 = vadd.f32 %v133_v54, %v124_v55 }
  0xc0   :  { %v144_v59 = vadd.f32 %v143_v56, %v134_v57 }
  0xc2   :  { %v149_v60 = vadd.f32 %v147_v58, %v144_v59 }
  0xc4   :  { %v174_v61 = vmul.f32 -1.442695, %v149_v60 }
  0xc6   :  { %199 = vpow2.f32 %v174_v61 }
  0xd3   :  { %v200_v62 = vpop.eup %199 }
  0xd4   :  { %v153_v63 = vadd.f32 1.0, %v200_v62 }
  0xd6   :  { %201 = vrcp.f32 %v153_v63 }
  0xe3   :  { %v202_v0 = vpop.eup %201 }
  0xe4   :  { %157 = vst.msk [vmem:[#allocation7] sm:$0x3] %vm156_vm0, %v202_v0 }
  0xe5   :  { %254 = shalt.err (!%p251_p0)
}
  0xe6   :  { %167 = dma.vmem_to_hbm [thread:$0]  %s165_s1, 32, %s305_s2, [#allocation4]  }
  0xe7   :  { %267 = dma.done.wait [#allocation4], 32  }
  0xe8   :  { %268 = vsyncadd [#allocation4], 4294967264 }
  0xe9   :  { %171 = vsyncpa [#allocation3], 1 }
  0xea   :  { %172 = vsyncpa [#allocation6], 1 }
  0xeb   :  { %173 = vsyncpa [#allocation4], 1 }

</bundles_post_ra>
